<compile_context>
chip_gen: v6e
topology: v6e:2x2x1
jax: 0.10.0
libtpu: 0.0.40
codegen_flags: <defaults>
</compile_context>

<pallas_src>
import functools

import jax
import jax.numpy as jnp
from jax import lax
from jax.experimental import pallas as pl
from jax.experimental.pallas import tpu as pltpu

n_embd = 32


def _round_up(x, m):
    return ((x + m - 1) // m) * m


def ffwd_kernel(x_ref, w_ref, b_ref, o_ref):
    # x_ref: (TM, D) f32  |  w_ref: (D, D) f32 (resident)
    # b_ref: (1, D)  f32 (resident)  |  o_ref: (TM, D) f32
    y = jnp.dot(
        x_ref[...],
        w_ref[...],
        preferred_element_type=jnp.float32,
        precision=lax.Precision.HIGHEST,
    )
    y = y + b_ref[...]            # broadcast (1, D) -> (TM, D), VPU
    o_ref[...] = jnp.maximum(y, 0.0).astype(o_ref.dtype)


@functools.partial(jax.jit, static_argnames=("block_tokens",))
def feed_forward(x, w, b, *, block_tokens=1024):
    """x: (B, T, D) float32; w: (D, D) laid out (in, out); b: (D,)."""
    B, T, D = x.shape
    tokens = B * T
    x2 = x.reshape(tokens, D)                     # free reshape

    # Token tile: multiple of 8 (sublane), capped by block_tokens.
    TM = min(block_tokens, _round_up(tokens, 8))
    tokens_p = _round_up(tokens, TM)
    if tokens_p != tokens:                        # usually a no-op
        x2 = jnp.pad(x2, ((0, tokens_p - tokens), (0, 0)))

    b2 = b.reshape(1, D)
    grid = (pl.cdiv(tokens_p, TM),)

    out = pl.pallas_call(
        ffwd_kernel,
        out_shape=jax.ShapeDtypeStruct((tokens_p, D), x.dtype),
        grid_spec=pltpu.PrefetchScalarGridSpec(
            num_scalar_prefetch=0,
            grid=grid,
            in_specs=[
                pl.BlockSpec((TM, D), lambda i: (i, 0)),   # x tile, streamed
                pl.BlockSpec((D, D), lambda i: (0, 0)),    # weight, resident
                pl.BlockSpec((1, D), lambda i: (0, 0)),    # bias, resident
            ],
            out_specs=pl.BlockSpec((TM, D), lambda i: (i, 0)),
        ),
        compiler_params=pltpu.CompilerParams(
            dimension_semantics=("parallel",),             # token axis: megacore
        ),
    )(x2, w, b2)

    if tokens_p != tokens:
        out = out[:tokens]
    return out.reshape(B, T, D)


def feed_forward_ref(x, w, b):
    y = jnp.einsum("btd,de->bte", x, w, precision=lax.Precision.HIGHEST) + b
    return jnp.maximum(y, 0.0)


if __name__ == "__main__":
    key = jax.random.PRNGKey(0)
    kx, kw, kb, kx2 = jax.random.split(key, 4)

    # Deterministic params mimicking nn.Linear init (uniform +-1/sqrt(fan_in)).
    # PyTorch stores weight (out, in) and computes x @ W.T; we store the
    # equivalent (in, out) matrix directly so the kernel computes x @ w.
    bound = 1.0 / jnp.sqrt(jnp.float32(n_embd))
    w = jax.random.uniform(kw, (n_embd, n_embd), jnp.float32, -bound, bound)
    b = jax.random.uniform(kb, (n_embd,), jnp.float32, -bound, bound)

    # 1) Small shape matching the module's typical use (B=2, T=8, n_embd=32).
    B, T = 2, 8
    x = jax.random.normal(kx, (B, T, n_embd), dtype=jnp.float32)
    out = feed_forward(x, w, b)
    jax.block_until_ready(out)
    ref = feed_forward_ref(x, w, b)
    assert out.shape == (B, T, n_embd)
    assert jnp.allclose(out, ref, atol=1e-4, rtol=1e-4), float(
        jnp.max(jnp.abs(out - ref))
    )

    # 2) Larger token count: multi-step grid, DMA/compute pipelining, megacore.
    B2, T2 = 4, 512
    xl = jax.random.normal(kx2, (B2, T2, n_embd), dtype=jnp.float32)
    out_l = feed_forward(xl, w, b)
    jax.block_until_ready(out_l)
    ref_l = feed_forward_ref(xl, w, b)
    assert out_l.shape == (B2, T2, n_embd)
    assert jnp.allclose(out_l, ref_l, atol=1e-4, rtol=1e-4), float(
        jnp.max(jnp.abs(out_l - ref_l))
    )

    print("KERNEL_OK")
</pallas_src>

<mosaic_0001>
module attributes {stable_mosaic.version = 11 : i64} {
  func.func @ffwd_kernel(%arg0: i32, %arg1: memref<16x32xf32, #tpu.memory_space<vmem>>, %arg2: memref<32x32xf32, #tpu.memory_space<vmem>>, %arg3: memref<1x32xf32, #tpu.memory_space<vmem>>, %arg4: memref<16x32xf32, #tpu.memory_space<vmem>>) attributes {dimension_semantics = [#tpu.dimension_semantics<parallel>], iteration_bounds = array<i64: 1>, scalar_prefetch = 0 : i64, scratch_operands = 0 : i64, tpu.core_type = #tpu.core_type<tc>, window_params = [{transform_indices = @transform_0, window_bounds = array<i64: 16, 32>}, {pipeline_mode = #tpu.pipeline_mode<synchronous>, transform_indices = @transform_1, window_bounds = array<i64: 32, 32>}, {pipeline_mode = #tpu.pipeline_mode<synchronous>, transform_indices = @transform_2, window_bounds = array<i64: 1, 32>}, {transform_indices = @transform_3, window_bounds = array<i64: 16, 32>}]} {
    %c0 = arith.constant 0 : index
    %c0_0 = arith.constant 0 : index
    %0 = vector.load %arg1[%c0, %c0_0] : memref<16x32xf32, #tpu.memory_space<vmem>>, vector<16x32xf32>
    %c0_1 = arith.constant 0 : index
    %c0_2 = arith.constant 0 : index
    %1 = vector.load %arg2[%c0_1, %c0_2] : memref<32x32xf32, #tpu.memory_space<vmem>>, vector<32x32xf32>
    %cst = arith.constant dense<0.000000e+00> : vector<16x32xf32>
    %2 = tpu.matmul %0, %1, %cst {dimension_numbers = #tpu.dot_dimension_numbers<[1], [0], [0], [1], [0, 0, 1, 1], [], []>, precision = #tpu.contract_precision<fp32>} : vector<16x32xf32>, vector<32x32xf32>, vector<16x32xf32> -> vector<16x32xf32>
    %c0_3 = arith.constant 0 : index
    %c0_4 = arith.constant 0 : index
    %3 = vector.load %arg3[%c0_3, %c0_4] : memref<1x32xf32, #tpu.memory_space<vmem>>, vector<1x32xf32>
    %4 = vector.broadcast %3 : vector<1x32xf32> to vector<16x32xf32>
    %5 = arith.addf %2, %4 : vector<16x32xf32>
    %cst_5 = arith.constant 0.000000e+00 : f32
    %6 = vector.broadcast %cst_5 : f32 to vector<16x32xf32>
    %7 = arith.maximumf %5, %6 : vector<16x32xf32>
    %c0_6 = arith.constant 0 : index
    %c0_7 = arith.constant 0 : index
    %8 = vector.load %arg4[%c0_6, %c0_7] : memref<16x32xf32, #tpu.memory_space<vmem>>, vector<16x32xf32>
    tpu.vector_store %arg4[%c0_6, %c0_7], %7 {strides = array<i32>} : memref<16x32xf32, #tpu.memory_space<vmem>>, vector<16x32xf32>,
    return
  }
  func.func @transform_0(%arg0: i32) -> (i32, i32) {
    %c0_i32 = arith.constant 0 : i32
    %c0_i32_0 = arith.constant 0 : i32
    return %arg0, %c0_i32 : i32, i32
  }
  func.func @transform_1(%arg0: i32) -> (i32, i32) {
    %c0_i32 = arith.constant 0 : i32
    %c0_i32_0 = arith.constant 0 : i32
    %c0_i32_1 = arith.constant 0 : i32
    return %c0_i32, %c0_i32_0 : i32, i32
  }
  func.func @transform_2(%arg0: i32) -> (i32, i32) {
    %c0_i32 = arith.constant 0 : i32
    %c0_i32_0 = arith.constant 0 : i32
    %c0_i32_1 = arith.constant 0 : i32
    return %c0_i32, %c0_i32_0 : i32, i32
  }
  func.func @transform_3(%arg0: i32) -> (i32, i32) {
    %c0_i32 = arith.constant 0 : i32
    %c0_i32_0 = arith.constant 0 : i32
    return %arg0, %c0_i32 : i32, i32
  }
}

</mosaic_0001>

<bundles_post_ra>
// kernel: feed_forward.1
= control target key start
LH: loop header
LB: loop body
LE: loop exit
PB: predicated region body
PF: predicated region fallthrough
CT: control target
= control target key end

     0   :  { %8 = vsyncpa [#allocation3], 0  ;;  %s885_s0 = inlined_call_operand.hbm [shape: f32[16,32], index: 0, kind: input, shape index: {}]   ;;  %s886_s1 = inlined_call_operand.hbm [shape: f32[32,32], index: 1, kind: input, shape index: {}]   ;;  %s887_s2 = inlined_call_operand.vmem [shape: f32[1,32], index: 2, kind: input, shape index: {}]   ;;  %s888_s3 = inlined_call_operand.hbm [shape: f32[16,32], index: 3, kind: output, shape index: {}]  }
   0x1   :  { %9 = vsyncpa [#allocation6], 0 }
   0x2   :  { %10 = vsyncpa [#allocation4], 0  ;;  %s787_s12 = smov [#allocation2]  }
   0x3   :  { %s16_s13 = sshll.u32 %s787_s12, 4  ;;  %s17_s13 = int_to_ptr.vmem [resolvable:$true] %s16_s13 }
   0x4   :  { %s729_s14 = scalar_lea.vmem %s17_s13, 256  ;;  %p734_p1 = scmp.lt.s32.totalorder %s17_s13, %s17_s13 }
   0x5   :  { %p730_p0 = scmp.ne.s32.totalorder %s17_s13, %s729_s14  ;;  %p735_p2 = scmp.lt.s32.totalorder %s729_s14, %s729_s14 }
   0x7   :  { %p736_p3 = por %p735_p2, %p734_p1 }
   0x9   :  { %p737_p4 = pnand %p736_p3, %p730_p0 }
   0xb   :  { %740 = shalt.err (!%p737_p4)
}
   0xc   :  { %s788_s15 = smov 128   ;;  %s789_s16 = smov 8  }
   0xd   :  { %22 = dma.hbm_to_vmem [thread:$0]  %s885_s0, 256, %s17_s13, [#allocation3], %s788_s15, %s788_s15, %s789_s16  }
   0xe   :  { %s790_s19 = smov [#allocation5]  }
   0xf   :  { %s28_s20 = sshll.u32 %s790_s19, 4  ;;  %s29_s20 = int_to_ptr.vmem [resolvable:$true] %s28_s20 }
  0x10   :  { %s749_s21 = scalar_lea.vmem %s29_s20, 512  ;;  %p754_p6 = scmp.lt.s32.totalorder %s29_s20, %s29_s20 }
  0x11   :  { %p750_p5 = scmp.ne.s32.totalorder %s29_s20, %s749_s21  ;;  %p755_p7 = scmp.lt.s32.totalorder %s749_s21, %s749_s21 }
  0x13   :  { %p756_p8 = por %p755_p7, %p754_p6 }
  0x15   :  { %p757_p9 = pnand %p756_p8, %p750_p5 }
  0x17   :  { %760 = shalt.err (!%p757_p9)
}
  0x18   :  { %34 = dma.hbm_to_vmem [thread:$0]  %s886_s1, 512, %s29_s20, [#allocation6], %s788_s15, %s788_s15, %s789_s16  }
  0x19   :  { %781 = dma.done.wait [#allocation3], 256  }
  0x1a   :  { %782 = vsyncadd [#allocation3], 4294967040 }
  0x1b   :  { %783 = dma.done.wait [#allocation6], 512  }
  0x1c   :  { %784 = vsyncadd [#allocation6], 4294966784  ;;  %vm56_vm0 = vcmask 261120   ;;  %v48_v0 = vld [vmem:[#allocation5 + $0x18] sm:$0xff]  ;;  %v47_v1 = vld [vmem:[#allocation5 + $0x10] sm:$0xff] }
  0x1d   :  { %v46_v2 = vld [vmem:[#allocation5 + $0x8] sm:$0xff]  ;;  %v824_v3 = vand.u32 4294901760, %v48_v0  ;;  %v826_v4 = vand.u32 4294901760, %v47_v1  ;;  %v45_v6 = vld [vmem:[#allocation5] sm:$0xff]  ;;  %v43_v7 = vld [vmem:[#allocation2] sm:$0xff] }
  0x1e   :  { %v828_v5 = vand.u32 4294901760, %v46_v2  ;;  %v44_v8 = vld [vmem:[#allocation2 + $0x8] sm:$0xff]  ;;  %v830_v9 = vand.u32 4294901760, %v45_v6  ;;  %v58_v10 = vsel %vm56_vm0, %v43_v7, 0  ;;  %v613_v39 = vld [vmem:[%s887_s2] ss:$0 sm:$0xff] }
  0x1f   :  { %v61_v11 = vsel %vm56_vm0, %v44_v8, 0  ;;  %650 = vmatprep.subr.mxu0 %v824_v3  ;;  %v178_v12 = vsub.f32 %v48_v0, %v824_v3  ;;  %v836_v13 = vand.u32 4294901760, %v58_v10  ;;  %v185_v14 = vsub.f32 %v47_v1, %v826_v4  ;;  %s791_s2 = smov [#allocation7]  }
  0x20   :  { %v839_v15 = vand.u32 4294901760, %v61_v11  ;;  %651 = vmatpush3.msra.mxu0 %v824_v3  ;;  %v192_v16 = vsub.f32 %v46_v2, %v828_v5  ;;  %v199_v17 = vsub.f32 %v45_v6, %v830_v9  ;;  %s600_s24 = sshll.u32 %s791_s2, 4  ;;  %s601_s24 = int_to_ptr.vmem [resolvable:$true] %s600_s24 }
  0x21   :  { %652 = vmatprep.subr.mxu0 %v826_v4  ;;  %v179_v18 = vand.u32 4294901760, %v178_v12  ;;  %v133_v19 = vsub.f32 %v58_v10, %v836_v13  ;;  %v186_v20 = vand.u32 4294901760, %v185_v14  ;;  %669 = vmatprep.mubr.f32.mxu1 %v836_v13  ;;  %s761_s25 = scalar_lea.vmem %s601_s24, 256  ;;  %p766_p11 = scmp.lt.s32.totalorder %s601_s24, %s601_s24 }
  0x22   :  { %v143_v21 = vsub.f32 %v61_v11, %v839_v15  ;;  %653 = vmatpush3.msra.mxu0 %v826_v4  ;;  %v193_v22 = vand.u32 4294901760, %v192_v16  ;;  %v200_v23 = vand.u32 4294901760, %v199_v17  ;;  %p762_p10 = scmp.ne.s32.totalorder %s601_s24, %s761_s25  ;;  %p767_p12 = scmp.lt.s32.totalorder %s761_s25, %s761_s25 }
  0x23   :  { %654 = vmatprep.subr.mxu0 %v828_v5  ;;  %v180_v24 = vsub.f32 %v178_v12, %v179_v18  ;;  %v134_v25 = vand.u32 4294901760, %v133_v19  ;;  %v187_v26 = vsub.f32 %v185_v14, %v186_v20 }
  0x24   :  { %v144_v27 = vand.u32 4294901760, %v143_v21  ;;  %655 = vmatpush3.msra.mxu0 %v828_v5  ;;  %v194_v28 = vsub.f32 %v192_v16, %v193_v22  ;;  %v201_v29 = vsub.f32 %v199_v17, %v200_v23  ;;  %p768_p13 = por %p767_p12, %p766_p11 }
  0x25   :  { %656 = vmatprep.subr.mxu0 %v830_v9  ;;  %v181_v30 = vand.u32 4294901760, %v180_v24  ;;  %v135_v31 = vsub.f32 %v133_v19, %v134_v25  ;;  %v188_v32 = vand.u32 4294901760, %v187_v26 }
  0x26   :  { %v145_v33 = vsub.f32 %v143_v21, %v144_v27  ;;  %657 = vmatpush3.msra.mxu0 %v830_v9  ;;  %v195_v36 = vand.u32 4294901760, %v194_v28  ;;  %v202_v37 = vand.u32 4294901760, %v201_v29  ;;  %p769_p0 = pnand %p768_p13, %p762_p10 }
  0x27   :  { %661 = vmatprep.subr.mxu1 %v181_v30  ;;  %v136_v34 = vand.u32 4294901760, %v135_v31  ;;  %672 = vmatprep.subr.mxu0 %v178_v12 }
  0x28   :  { %v146_v35 = vand.u32 4294901760, %v145_v33  ;;  %662 = vmatpush3.msra.mxu1 %v181_v30 }
  0x29   :  { %658 = vmatprep.mubr.f32.mxu0 %v136_v34  ;;  %663 = vmatprep.subr.mxu1 %v188_v32 }
  0x2a   :  { %659 = vmatmul.mubr.f32.vlgmr.msra.gmra.mxu0 %v146_v35  ;;  %664 = vmatpush3.msra.mxu1 %v188_v32 }
  0x2b   :  { %673 = vmatpush3.msra.mxu0 %v178_v12  ;;  %665 = vmatprep.subr.mxu1 %v195_v36 }
  0x2c   :  { %674 = vmatprep.subr.mxu0 %v185_v14  ;;  %666 = vmatpush3.msra.mxu1 %v195_v36 }
  0x2d   :  { %675 = vmatpush3.msra.mxu0 %v185_v14  ;;  %667 = vmatprep.subr.mxu1 %v202_v37 }
  0x2e   :  { %676 = vmatprep.subr.mxu0 %v192_v16  ;;  %668 = vmatpush3.msra.mxu1 %v202_v37 }
  0x2f   :  { %677 = vmatpush3.msra.mxu0 %v192_v16  ;;  %670 = vmatmul.mubr.f32.vlgmr.msra.gmra.mxu1 %v839_v15 }
  0x30   :  { %678 = vmatprep.subr.mxu0 %v199_v17  ;;  %683 = vmatprep.subr.mxu1 %v824_v3 }
  0x31   :  { %679 = vmatpush3.msra.mxu0 %v199_v17  ;;  %680 = vmatprep.mubr.f32.mxu0 %v133_v19 }
  0x32   :  { %684 = vmatpush3.msra.mxu1 %v824_v3  ;;  %681 = vmatmul.mubr.f32.vlgmr.msra.gmra.mxu0 %v143_v21 }
  0x33   :  { %685 = vmatprep.subr.mxu1 %v826_v4  ;;  %694 = vmatprep.subr.mxu0 %v179_v18 }
  0x34   :  { %686 = vmatpush3.msra.mxu1 %v826_v4  ;;  %695 = vmatpush3.msra.mxu0 %v179_v18 }
  0x35   :  { %687 = vmatprep.subr.mxu1 %v828_v5  ;;  %696 = vmatprep.subr.mxu0 %v186_v20 }
  0x36   :  { %688 = vmatpush3.msra.mxu1 %v828_v5  ;;  %697 = vmatpush3.msra.mxu0 %v186_v20 }
  0x37   :  { %689 = vmatprep.subr.mxu1 %v830_v9  ;;  %698 = vmatprep.subr.mxu0 %v193_v22 }
  0x38   :  { %690 = vmatpush3.msra.mxu1 %v830_v9  ;;  %691 = vmatprep.mubr.f32.mxu1 %v134_v25 }
  0x39   :  { %699 = vmatpush3.msra.mxu0 %v193_v22  ;;  %692 = vmatmul.mubr.f32.vlgmr.msra.gmra.mxu1 %v144_v27 }
  0x3a   :  { %700 = vmatprep.subr.mxu0 %v200_v23  ;;  %705 = vmatprep.subr.mxu1 %v824_v3 }
  0x3b   :  { %701 = vmatpush3.msra.mxu0 %v200_v23  ;;  %702 = vmatprep.mubr.f32.mxu0 %v836_v13 }
  0x3c   :  { %706 = vmatpush3.msra.mxu1 %v824_v3  ;;  %703 = vmatmul.mubr.f32.vlgmr.msra.gmra.mxu0 %v839_v15 }
  0x3d   :  { %707 = vmatprep.subr.mxu1 %v826_v4  ;;  %713 = vmatprep.mubr.f32.mxu1 %v836_v13 }
  0x3e   :  { %708 = vmatpush3.msra.mxu1 %v826_v4 }
  0x3f   :  { %709 = vmatprep.subr.mxu1 %v828_v5 }
  0x40   :  { %710 = vmatpush3.msra.mxu1 %v828_v5 }
  0x41   :  { %711 = vmatprep.subr.mxu1 %v830_v9 }
  0x42   :  { %712 = vmatpush3.msra.mxu1 %v830_v9 }
  0x43   :  { %714 = vmatmul.mubr.f32.vlgmr.msra.gmra.mxu1 %v839_v15 }
  0xea   :  { %v660_v38 = vpop.f32.mrf.mxu0 }
  0xeb   :  { %v149_v42 = vadd.f32 %v660_v38, %v613_v39 }
  0xec   :  { %v138_v40 = vpop.f32.mrf.mxu0 }
  0xed   :  { %v139_v43 = vadd.f32 %v613_v39, %v138_v40 }
  0xef   :  { %v671_v41 = vpop.f32.mrf.mxu1 }
  0xf0   :  { %v246_v46 = vadd.f32 %v671_v41, %v149_v42 }
  0xf1   :  { %v239_v44 = vpop.f32.mrf.mxu1 }
  0xf2   :  { %v682_v45 = vpop.f32.mrf.mxu0  ;;  %v240_v48 = vadd.f32 %v239_v44, %v139_v43 }
  0xf3   :  { %v333_v50 = vadd.f32 %v682_v45, %v246_v46 }
  0xf4   :  { %v325_v49 = vpop.f32.mrf.mxu0 }
  0xf5   :  { %v326_v53 = vadd.f32 %v325_v49, %v240_v48 }
  0xf9   :  { %v693_v47 = vpop.f32.mrf.mxu1 }
  0xfa   :  { %v418_v54 = vadd.f32 %v693_v47, %v333_v50 }
  0xfb   :  { %v409_v51 = vpop.f32.mrf.mxu1 }
  0xfc   :  { %v704_v52 = vpop.f32.mrf.mxu0  ;;  %v410_v55 = vadd.f32 %v409_v51, %v326_v53 }
  0xfd   :  { %v507_v57 = vadd.f32 %v704_v52, %v418_v54 }
  0xfe   :  { %v500_v56 = vpop.f32.mrf.mxu0 }
  0xff   :  { %v501_v59 = vadd.f32 %v500_v56, %v410_v55 }
 0x103   :  { %v715_v58 = vpop.f32.mrf.mxu1 }
 0x104   :  { %v588_v60 = vadd.f32 %v715_v58, %v507_v57 }
 0x105   :  { %v581_v61 = vpop.f32.mrf.mxu1 }
 0x106   :  { %v592_v62 = vmax.f32 %v588_v60, 0.0  ;;  %v582_v63 = vadd.f32 %v581_v61, %v501_v59 }
 0x108   :  { %594 = vst.msk [vmem:[#allocation7 + $0x8] sm:$0xff] %vm56_vm0, %v592_v62  ;;  %v591_v0 = vmax.f32 %v582_v63, 0.0 }
 0x10a   :  { %593 = vst.msk [vmem:[#allocation7] sm:$0xff] %vm56_vm0, %v591_v0 }
 0x10b   :  { %772 = shalt.err (!%p769_p0)
}
 0x10c   :  { %606 = dma.vmem_to_hbm [thread:$0]  %s601_s24, 256, %s888_s3, [#allocation4], %s788_s15, %s788_s15, %s789_s16  }
 0x10d   :  { %785 = dma.done.wait [#allocation4], 256  }
 0x10e   :  { %786 = vsyncadd [#allocation4], 4294967040 }
 0x10f   :  { %610 = vsyncpa [#allocation3], 1 }
 0x110   :  { %611 = vsyncpa [#allocation6], 1 }
 0x111   :  { %612 = vsyncpa [#allocation4], 1 }

</bundles_post_ra>
